<compile_context>
chip_gen: v6e
topology: v6e:2x2x1
jax: 0.10.0
libtpu: 0.0.40
codegen_flags: <defaults>
</compile_context>

<pallas_src>
import functools

import jax
import jax.numpy as jnp
import numpy as np
from jax import lax
from jax.experimental import pallas as pl
from jax.experimental.pallas import tpu as pltpu


def _round_up(x: int, m: int) -> int:
    return (x + m - 1) // m * m


# ----------------------------------------------------------------------------
# Fused Pallas kernel: all hidden 3x3+ReLU layers and the final 1x1 conv for
# one batch element.  Activations live in (C, H*W) orientation and stay in
# VMEM/vregs between layers.
# ----------------------------------------------------------------------------
def _fused_displacement_kernel(col_ref, row_ref, x_ref, *wb_and_out,
                               H: int, W: int, n_hidden: int):
    """
    col_ref : (1, H*W) int32   per-pixel column index (w)
    row_ref : (1, H*W) int32   per-pixel row index (h)
    x_ref   : (C0p, H*W)       input, channels zero-padded to a multiple of 8
    wb_and_out = (w0, b0, ..., w_{nh-1}, b_{nh-1}, wf, bf, o_ref) where
        w_i : (C_{i+1}p, 9*C_ip)  im2col-flattened 3x3 weights (tap-major)
        b_i : (C_{i+1}p, 1)
        wf  : (Cout, Clast_p)     1x1 conv weights
        bf  : (Cout, 1)
        o_ref : (Cout, H*W)
    """
    o_ref = wb_and_out[-1]
    wb = wb_and_out[:-1]
    HW = H * W

    col = col_ref[...]                      # (1, HW) int32
    row = row_ref[...]                      # (1, HW) int32

    # Boundary-validity masks (as {0,1} f32) for the nine 3x3 taps; computed
    # once and reused by every hidden layer.  This replaces the padded HBM
    # array of the previous version.
    taps = [(dh, dw) for dh in (-1, 0, 1) for dw in (-1, 0, 1)]
    masks = []
    for dh, dw in taps:
        m = ((row + dh >= 0) & (row + dh < H) &
             (col + dw >= 0) & (col + dw < W))
        masks.append(m.astype(jnp.float32))  # (1, HW)

    act = x_ref[...].astype(jnp.float32)     # (Cp, HW)

    for li in range(n_hidden):
        w = wb[2 * li][...]                  # (Coutp, 9*Cinp)
        b = wb[2 * li + 1][...]              # (Coutp, 1)
        # im2col: nine lane-rolled, boundary-masked copies of the activation,
        # stacked on the (8-aligned) sublane axis -> one MXU matmul with
        # K = 9*Cinp instead of nine tiny K=Cin matmuls / unaligned slices.
        pieces = []
        for t, (dh, dw) in enumerate(taps):
            off = dh * W + dw                # flat source offset of this tap
            if off == 0:
                pieces.append(act)
                continue
            shifted = pltpu.roll(act, (-off) % HW, axis=1)   # XLU rotation
            pieces.append(shifted * masks[t])                # zero the borders
        patches = jnp.concatenate(pieces, axis=0)            # (9*Cinp, HW)
        acc = jnp.dot(w, patches, preferred_element_type=jnp.float32)
        act = jnp.maximum(acc + b, 0.0)      # bias + ReLU; stays on-chip

    # Final 1x1 conv (no ReLU), written directly in (Cout, H*W) layout so the
    # HBM output is NCHW with a lane-dense last dim.
    wf = wb[2 * n_hidden][...]               # (Cout, Clastp)
    bf = wb[2 * n_hidden + 1][...]           # (Cout, 1)
    y = jnp.dot(wf, act, preferred_element_type=jnp.float32) + bf
    o_ref[...] = y.astype(o_ref.dtype)


# ----------------------------------------------------------------------------
# Parameter packing: PyTorch-layout params -> kernel-layout, channel-padded.
# ----------------------------------------------------------------------------
def _pack_params(params):
    """Channels are rounded up to multiples of 8 (sublane tile) so the
    in-kernel im2col concat is tile-aligned; padded rows/cols are zero, so
    padded channels carry exact zeros through every layer (ReLU(0)=0)."""
    hidden = params["hidden"]
    wf, bf = params["final"]
    packed = []
    cin0 = hidden[0][0].shape[1] if hidden else wf.shape[1]
    cin_p = _round_up(cin0, 8)
    for w, b in hidden:                      # w: (cout, cin, 3, 3), b: (cout,)
        cout, cin = w.shape[0], w.shape[1]
        cout_p = _round_up(cout, 8)
        wk = jnp.transpose(w, (0, 2, 3, 1))  # (cout, 3, 3, cin) tap-major
        wk = jnp.pad(wk, ((0, cout_p - cout), (0, 0), (0, 0),
                          (0, cin_p - cin)))
        packed.append(wk.reshape(cout_p, 9 * cin_p))
        packed.append(jnp.pad(b, (0, cout_p - cout)).reshape(cout_p, 1))
        cin_p = cout_p
    cout = wf.shape[0]
    packed.append(jnp.pad(wf, ((0, 0), (0, cin_p - wf.shape[1]))))
    packed.append(bf.reshape(cout, 1))
    return packed


# ----------------------------------------------------------------------------
# DisplacementLayer2D forward (NCHW in, NCHW out — matches the torch module)
# ----------------------------------------------------------------------------
@jax.jit
def displacement_layer_2d(x_nchw, params):
    N, C, H, W = x_nchw.shape
    HW = H * W
    n_hidden = len(params["hidden"])
    out_ch = params["final"][0].shape[0]
    c0p = _round_up(C, 8)

    # NCHW is already channel-major: just merge (H, W) -> H*W (free reshape,
    # no transpose) and zero-pad channels up to the sublane tile.
    x_flat = x_nchw.reshape(N, C, HW)
    if c0p != C:
        x_flat = jnp.pad(x_flat, ((0, 0), (0, c0p - C), (0, 0)))

    packed = _pack_params(params)

    # Per-pixel (h, w) indices for the boundary masks — trace-time constants.
    idx = np.arange(HW, dtype=np.int32)
    row_ids = jnp.asarray((idx // W).reshape(1, HW))
    col_ids = jnp.asarray((idx % W).reshape(1, HW))

    kernel = functools.partial(_fused_displacement_kernel,
                               H=H, W=W, n_hidden=n_hidden)

    in_specs = [
        pl.BlockSpec((1, HW), lambda n: (0, 0)),              # col_ids
        pl.BlockSpec((1, HW), lambda n: (0, 0)),              # row_ids
        pl.BlockSpec((None, c0p, HW), lambda n: (n, 0, 0)),   # x (per batch)
    ]
    in_specs += [pl.BlockSpec(a.shape, lambda n: (0, 0)) for a in packed]

    out = pl.pallas_call(
        kernel,
        out_shape=jax.ShapeDtypeStruct((N, out_ch, HW), x_nchw.dtype),
        grid=(N,),
        in_specs=in_specs,
        out_specs=pl.BlockSpec((None, out_ch, HW), lambda n: (n, 0, 0)),
        compiler_params=pltpu.CompilerParams(
            dimension_semantics=("parallel",)),   # batch across TCs on v7x
    )(col_ids, row_ids, x_flat, *packed)

    return out.reshape(N, out_ch, H, W)


# ----------------------------------------------------------------------------
# Init (mimics PyTorch Conv2d defaults, OIHW weights) + pure-JAX reference
# ----------------------------------------------------------------------------
def init_params(key, c_in, hidden, num_keypoints, dtype=jnp.float32):
    params = {"hidden": [], "final": None}
    channels = [c_in] + list(hidden)
    for prv, nxt in zip(channels[:-1], channels[1:]):
        key, kw, kb = jax.random.split(key, 3)
        bound = 1.0 / np.sqrt(prv * 3 * 3)
        w = jax.random.uniform(kw, (nxt, prv, 3, 3), dtype, -bound, bound)
        b = jax.random.uniform(kb, (nxt,), dtype, -bound, bound)
        params["hidden"].append((w, b))
    out_ch = num_keypoints * 2
    key, kw, kb = jax.random.split(key, 3)
    bound = 1.0 / np.sqrt(channels[-1])
    w = jax.random.uniform(kw, (out_ch, channels[-1]), dtype, -bound, bound)
    b = jax.random.uniform(kb, (out_ch,), dtype, -bound, bound)
    params["final"] = (w, b)
    return params


def reference(x_nchw, params):
    y = x_nchw
    for w, b in params["hidden"]:
        y = lax.conv_general_dilated(
            y, w, window_strides=(1, 1), padding="SAME",
            dimension_numbers=("NCHW", "OIHW", "NCHW"))
        y = jnp.maximum(y + b[None, :, None, None], 0.0)
    wf, bf = params["final"]
    y = jnp.einsum("nchw,oc->nohw", y, wf) + bf[None, :, None, None]
    return y


if __name__ == "__main__":
    key = jax.random.PRNGKey(0)
    N, C_IN, H, W = 2, 4, 16, 16
    HIDDEN = (8,)
    NUM_KEYPOINTS = 9

    k_x, k_p = jax.random.split(key)
    x = jax.random.normal(k_x, (N, C_IN, H, W), jnp.float32)
    params = init_params(k_p, C_IN, HIDDEN, NUM_KEYPOINTS)

    out = jax.block_until_ready(displacement_layer_2d(x, params))
    assert out.shape == (N, NUM_KEYPOINTS * 2, H, W), out.shape

    ref = reference(x, params)
    err = float(jnp.max(jnp.abs(out - ref)))
    assert jnp.allclose(out, ref, atol=5e-4, rtol=5e-4), err

    print("KERNEL_OK")
</pallas_src>

<mosaic_0001>
module attributes {stable_mosaic.version = 11 : i64} {
  func.func @_fused_displacement_kernel(%arg0: i32, %arg1: memref<1x256xi32, #tpu.memory_space<vmem>>, %arg2: memref<1x256xi32, #tpu.memory_space<vmem>>, %arg3: memref<1x8x256xf32, #tpu.memory_space<vmem>>, %arg4: memref<8x72xf32, #tpu.memory_space<vmem>>, %arg5: memref<8x1xf32, #tpu.memory_space<vmem>>, %arg6: memref<18x8xf32, #tpu.memory_space<vmem>>, %arg7: memref<18x1xf32, #tpu.memory_space<vmem>>, %arg8: memref<1x18x256xf32, #tpu.memory_space<vmem>>) attributes {dimension_semantics = [#tpu.dimension_semantics<parallel>], iteration_bounds = array<i64: 2>, scalar_prefetch = 0 : i64, scratch_operands = 0 : i64, tpu.core_type = #tpu.core_type<tc>, window_params = [{pipeline_mode = #tpu.pipeline_mode<synchronous>, transform_indices = @transform_0, window_bounds = array<i64: 1, 256>}, {pipeline_mode = #tpu.pipeline_mode<synchronous>, transform_indices = @transform_1, window_bounds = array<i64: 1, 256>}, {transform_indices = @transform_2, window_bounds = array<i64: 1, 8, 256>}, {pipeline_mode = #tpu.pipeline_mode<synchronous>, transform_indices = @transform_3, window_bounds = array<i64: 8, 72>}, {pipeline_mode = #tpu.pipeline_mode<synchronous>, transform_indices = @transform_4, window_bounds = array<i64: 8, 1>}, {pipeline_mode = #tpu.pipeline_mode<synchronous>, transform_indices = @transform_5, window_bounds = array<i64: 18, 8>}, {pipeline_mode = #tpu.pipeline_mode<synchronous>, transform_indices = @transform_6, window_bounds = array<i64: 18, 1>}, {transform_indices = @transform_7, window_bounds = array<i64: 1, 18, 256>}]} {
    %c0 = arith.constant 0 : index
    %c0_0 = arith.constant 0 : index
    %0 = vector.load %arg1[%c0, %c0_0] : memref<1x256xi32, #tpu.memory_space<vmem>>, vector<1x256xi32>
    %c0_1 = arith.constant 0 : index
    %c0_2 = arith.constant 0 : index
    %1 = vector.load %arg2[%c0_1, %c0_2] : memref<1x256xi32, #tpu.memory_space<vmem>>, vector<1x256xi32>
    %c-1_i32 = arith.constant -1 : i32
    %2 = vector.broadcast %c-1_i32 : i32 to vector<1x256xi32>
    %3 = arith.addi %1, %2 : vector<1x256xi32>
    %c0_i32 = arith.constant 0 : i32
    %4 = vector.broadcast %c0_i32 : i32 to vector<1x256xi32>
    %5 = arith.cmpi sge, %3, %4 : vector<1x256xi32>
    %c-1_i32_3 = arith.constant -1 : i32
    %6 = vector.broadcast %c-1_i32_3 : i32 to vector<1x256xi32>
    %7 = arith.addi %1, %6 : vector<1x256xi32>
    %c16_i32 = arith.constant 16 : i32
    %8 = vector.broadcast %c16_i32 : i32 to vector<1x256xi32>
    %9 = arith.cmpi slt, %7, %8 : vector<1x256xi32>
    %10 = arith.andi %5, %9 : vector<1x256xi1>
    %c-1_i32_4 = arith.constant -1 : i32
    %11 = vector.broadcast %c-1_i32_4 : i32 to vector<1x256xi32>
    %12 = arith.addi %0, %11 : vector<1x256xi32>
    %c0_i32_5 = arith.constant 0 : i32
    %13 = vector.broadcast %c0_i32_5 : i32 to vector<1x256xi32>
    %14 = arith.cmpi sge, %12, %13 : vector<1x256xi32>
    %15 = arith.andi %10, %14 : vector<1x256xi1>
    %c-1_i32_6 = arith.constant -1 : i32
    %16 = vector.broadcast %c-1_i32_6 : i32 to vector<1x256xi32>
    %17 = arith.addi %0, %16 : vector<1x256xi32>
    %c16_i32_7 = arith.constant 16 : i32
    %18 = vector.broadcast %c16_i32_7 : i32 to vector<1x256xi32>
    %19 = arith.cmpi slt, %17, %18 : vector<1x256xi32>
    %20 = arith.andi %15, %19 : vector<1x256xi1>
    %21 = arith.extui %20 : vector<1x256xi1> to vector<1x256xi32>
    %22 = arith.sitofp %21 : vector<1x256xi32> to vector<1x256xf32>
    %c-1_i32_8 = arith.constant -1 : i32
    %23 = vector.broadcast %c-1_i32_8 : i32 to vector<1x256xi32>
    %24 = arith.addi %1, %23 : vector<1x256xi32>
    %c0_i32_9 = arith.constant 0 : i32
    %25 = vector.broadcast %c0_i32_9 : i32 to vector<1x256xi32>
    %26 = arith.cmpi sge, %24, %25 : vector<1x256xi32>
    %c-1_i32_10 = arith.constant -1 : i32
    %27 = vector.broadcast %c-1_i32_10 : i32 to vector<1x256xi32>
    %28 = arith.addi %1, %27 : vector<1x256xi32>
    %c16_i32_11 = arith.constant 16 : i32
    %29 = vector.broadcast %c16_i32_11 : i32 to vector<1x256xi32>
    %30 = arith.cmpi slt, %28, %29 : vector<1x256xi32>
    %31 = arith.andi %26, %30 : vector<1x256xi1>
    %c0_i32_12 = arith.constant 0 : i32
    %32 = vector.broadcast %c0_i32_12 : i32 to vector<1x256xi32>
    %33 = arith.addi %0, %32 : vector<1x256xi32>
    %c0_i32_13 = arith.constant 0 : i32
    %34 = vector.broadcast %c0_i32_13 : i32 to vector<1x256xi32>
    %35 = arith.cmpi sge, %33, %34 : vector<1x256xi32>
    %36 = arith.andi %31, %35 : vector<1x256xi1>
    %c0_i32_14 = arith.constant 0 : i32
    %37 = vector.broadcast %c0_i32_14 : i32 to vector<1x256xi32>
    %38 = arith.addi %0, %37 : vector<1x256xi32>
    %c16_i32_15 = arith.constant 16 : i32
    %39 = vector.broadcast %c16_i32_15 : i32 to vector<1x256xi32>
    %40 = arith.cmpi slt, %38, %39 : vector<1x256xi32>
    %41 = arith.andi %36, %40 : vector<1x256xi1>
    %42 = arith.extui %41 : vector<1x256xi1> to vector<1x256xi32>
    %43 = arith.sitofp %42 : vector<1x256xi32> to vector<1x256xf32>
    %c-1_i32_16 = arith.constant -1 : i32
    %44 = vector.broadcast %c-1_i32_16 : i32 to vector<1x256xi32>
    %45 = arith.addi %1, %44 : vector<1x256xi32>
    %c0_i32_17 = arith.constant 0 : i32
    %46 = vector.broadcast %c0_i32_17 : i32 to vector<1x256xi32>
    %47 = arith.cmpi sge, %45, %46 : vector<1x256xi32>
    %c-1_i32_18 = arith.constant -1 : i32
    %48 = vector.broadcast %c-1_i32_18 : i32 to vector<1x256xi32>
    %49 = arith.addi %1, %48 : vector<1x256xi32>
    %c16_i32_19 = arith.constant 16 : i32
    %50 = vector.broadcast %c16_i32_19 : i32 to vector<1x256xi32>
    %51 = arith.cmpi slt, %49, %50 : vector<1x256xi32>
    %52 = arith.andi %47, %51 : vector<1x256xi1>
    %c1_i32 = arith.constant 1 : i32
    %53 = vector.broadcast %c1_i32 : i32 to vector<1x256xi32>
    %54 = arith.addi %0, %53 : vector<1x256xi32>
    %c0_i32_20 = arith.constant 0 : i32
    %55 = vector.broadcast %c0_i32_20 : i32 to vector<1x256xi32>
    %56 = arith.cmpi sge, %54, %55 : vector<1x256xi32>
    %57 = arith.andi %52, %56 : vector<1x256xi1>
    %c1_i32_21 = arith.constant 1 : i32
    %58 = vector.broadcast %c1_i32_21 : i32 to vector<1x256xi32>
    %59 = arith.addi %0, %58 : vector<1x256xi32>
    %c16_i32_22 = arith.constant 16 : i32
    %60 = vector.broadcast %c16_i32_22 : i32 to vector<1x256xi32>
    %61 = arith.cmpi slt, %59, %60 : vector<1x256xi32>
    %62 = arith.andi %57, %61 : vector<1x256xi1>
    %63 = arith.extui %62 : vector<1x256xi1> to vector<1x256xi32>
    %64 = arith.sitofp %63 : vector<1x256xi32> to vector<1x256xf32>
    %c0_i32_23 = arith.constant 0 : i32
    %65 = vector.broadcast %c0_i32_23 : i32 to vector<1x256xi32>
    %66 = arith.addi %1, %65 : vector<1x256xi32>
    %c0_i32_24 = arith.constant 0 : i32
    %67 = vector.broadcast %c0_i32_24 : i32 to vector<1x256xi32>
    %68 = arith.cmpi sge, %66, %67 : vector<1x256xi32>
    %c0_i32_25 = arith.constant 0 : i32
    %69 = vector.broadcast %c0_i32_25 : i32 to vector<1x256xi32>
    %70 = arith.addi %1, %69 : vector<1x256xi32>
    %c16_i32_26 = arith.constant 16 : i32
    %71 = vector.broadcast %c16_i32_26 : i32 to vector<1x256xi32>
    %72 = arith.cmpi slt, %70, %71 : vector<1x256xi32>
    %73 = arith.andi %68, %72 : vector<1x256xi1>
    %c-1_i32_27 = arith.constant -1 : i32
    %74 = vector.broadcast %c-1_i32_27 : i32 to vector<1x256xi32>
    %75 = arith.addi %0, %74 : vector<1x256xi32>
    %c0_i32_28 = arith.constant 0 : i32
    %76 = vector.broadcast %c0_i32_28 : i32 to vector<1x256xi32>
    %77 = arith.cmpi sge, %75, %76 : vector<1x256xi32>
    %78 = arith.andi %73, %77 : vector<1x256xi1>
    %c-1_i32_29 = arith.constant -1 : i32
    %79 = vector.broadcast %c-1_i32_29 : i32 to vector<1x256xi32>
    %80 = arith.addi %0, %79 : vector<1x256xi32>
    %c16_i32_30 = arith.constant 16 : i32
    %81 = vector.broadcast %c16_i32_30 : i32 to vector<1x256xi32>
    %82 = arith.cmpi slt, %80, %81 : vector<1x256xi32>
    %83 = arith.andi %78, %82 : vector<1x256xi1>
    %84 = arith.extui %83 : vector<1x256xi1> to vector<1x256xi32>
    %85 = arith.sitofp %84 : vector<1x256xi32> to vector<1x256xf32>
    %c0_i32_31 = arith.constant 0 : i32
    %86 = vector.broadcast %c0_i32_31 : i32 to vector<1x256xi32>
    %87 = arith.addi %1, %86 : vector<1x256xi32>
    %c0_i32_32 = arith.constant 0 : i32
    %88 = vector.broadcast %c0_i32_32 : i32 to vector<1x256xi32>
    %89 = arith.cmpi sge, %87, %88 : vector<1x256xi32>
    %c0_i32_33 = arith.constant 0 : i32
    %90 = vector.broadcast %c0_i32_33 : i32 to vector<1x256xi32>
    %91 = arith.addi %1, %90 : vector<1x256xi32>
    %c16_i32_34 = arith.constant 16 : i32
    %92 = vector.broadcast %c16_i32_34 : i32 to vector<1x256xi32>
    %93 = arith.cmpi slt, %91, %92 : vector<1x256xi32>
    %94 = arith.andi %89, %93 : vector<1x256xi1>
    %c1_i32_35 = arith.constant 1 : i32
    %95 = vector.broadcast %c1_i32_35 : i32 to vector<1x256xi32>
    %96 = arith.addi %0, %95 : vector<1x256xi32>
    %c0_i32_36 = arith.constant 0 : i32
    %97 = vector.broadcast %c0_i32_36 : i32 to vector<1x256xi32>
    %98 = arith.cmpi sge, %96, %97 : vector<1x256xi32>
    %99 = arith.andi %94, %98 : vector<1x256xi1>
    %c1_i32_37 = arith.constant 1 : i32
    %100 = vector.broadcast %c1_i32_37 : i32 to vector<1x256xi32>
    %101 = arith.addi %0, %100 : vector<1x256xi32>
    %c16_i32_38 = arith.constant 16 : i32
    %102 = vector.broadcast %c16_i32_38 : i32 to vector<1x256xi32>
    %103 = arith.cmpi slt, %101, %102 : vector<1x256xi32>
    %104 = arith.andi %99, %103 : vector<1x256xi1>
    %105 = arith.extui %104 : vector<1x256xi1> to vector<1x256xi32>
    %106 = arith.sitofp %105 : vector<1x256xi32> to vector<1x256xf32>
    %c1_i32_39 = arith.constant 1 : i32
    %107 = vector.broadcast %c1_i32_39 : i32 to vector<1x256xi32>
    %108 = arith.addi %1, %107 : vector<1x256xi32>
    %c0_i32_40 = arith.constant 0 : i32
    %109 = vector.broadcast %c0_i32_40 : i32 to vector<1x256xi32>
    %110 = arith.cmpi sge, %108, %109 : vector<1x256xi32>
    %c1_i32_41 = arith.constant 1 : i32
    %111 = vector.broadcast %c1_i32_41 : i32 to vector<1x256xi32>
    %112 = arith.addi %1, %111 : vector<1x256xi32>
    %c16_i32_42 = arith.constant 16 : i32
    %113 = vector.broadcast %c16_i32_42 : i32 to vector<1x256xi32>
    %114 = arith.cmpi slt, %112, %113 : vector<1x256xi32>
    %115 = arith.andi %110, %114 : vector<1x256xi1>
    %c-1_i32_43 = arith.constant -1 : i32
    %116 = vector.broadcast %c-1_i32_43 : i32 to vector<1x256xi32>
    %117 = arith.addi %0, %116 : vector<1x256xi32>
    %c0_i32_44 = arith.constant 0 : i32
    %118 = vector.broadcast %c0_i32_44 : i32 to vector<1x256xi32>
    %119 = arith.cmpi sge, %117, %118 : vector<1x256xi32>
    %120 = arith.andi %115, %119 : vector<1x256xi1>
    %c-1_i32_45 = arith.constant -1 : i32
    %121 = vector.broadcast %c-1_i32_45 : i32 to vector<1x256xi32>
    %122 = arith.addi %0, %121 : vector<1x256xi32>
    %c16_i32_46 = arith.constant 16 : i32
    %123 = vector.broadcast %c16_i32_46 : i32 to vector<1x256xi32>
    %124 = arith.cmpi slt, %122, %123 : vector<1x256xi32>
    %125 = arith.andi %120, %124 : vector<1x256xi1>
    %126 = arith.extui %125 : vector<1x256xi1> to vector<1x256xi32>
    %127 = arith.sitofp %126 : vector<1x256xi32> to vector<1x256xf32>
    %c1_i32_47 = arith.constant 1 : i32
    %128 = vector.broadcast %c1_i32_47 : i32 to vector<1x256xi32>
    %129 = arith.addi %1, %128 : vector<1x256xi32>
    %c0_i32_48 = arith.constant 0 : i32
    %130 = vector.broadcast %c0_i32_48 : i32 to vector<1x256xi32>
    %131 = arith.cmpi sge, %129, %130 : vector<1x256xi32>
    %c1_i32_49 = arith.constant 1 : i32
    %132 = vector.broadcast %c1_i32_49 : i32 to vector<1x256xi32>
    %133 = arith.addi %1, %132 : vector<1x256xi32>
    %c16_i32_50 = arith.constant 16 : i32
    %134 = vector.broadcast %c16_i32_50 : i32 to vector<1x256xi32>
    %135 = arith.cmpi slt, %133, %134 : vector<1x256xi32>
    %136 = arith.andi %131, %135 : vector<1x256xi1>
    %c0_i32_51 = arith.constant 0 : i32
    %137 = vector.broadcast %c0_i32_51 : i32 to vector<1x256xi32>
    %138 = arith.addi %0, %137 : vector<1x256xi32>
    %c0_i32_52 = arith.constant 0 : i32
    %139 = vector.broadcast %c0_i32_52 : i32 to vector<1x256xi32>
    %140 = arith.cmpi sge, %138, %139 : vector<1x256xi32>
    %141 = arith.andi %136, %140 : vector<1x256xi1>
    %c0_i32_53 = arith.constant 0 : i32
    %142 = vector.broadcast %c0_i32_53 : i32 to vector<1x256xi32>
    %143 = arith.addi %0, %142 : vector<1x256xi32>
    %c16_i32_54 = arith.constant 16 : i32
    %144 = vector.broadcast %c16_i32_54 : i32 to vector<1x256xi32>
    %145 = arith.cmpi slt, %143, %144 : vector<1x256xi32>
    %146 = arith.andi %141, %145 : vector<1x256xi1>
    %147 = arith.extui %146 : vector<1x256xi1> to vector<1x256xi32>
    %148 = arith.sitofp %147 : vector<1x256xi32> to vector<1x256xf32>
    %c1_i32_55 = arith.constant 1 : i32
    %149 = vector.broadcast %c1_i32_55 : i32 to vector<1x256xi32>
    %150 = arith.addi %1, %149 : vector<1x256xi32>
    %c0_i32_56 = arith.constant 0 : i32
    %151 = vector.broadcast %c0_i32_56 : i32 to vector<1x256xi32>
    %152 = arith.cmpi sge, %150, %151 : vector<1x256xi32>
    %c1_i32_57 = arith.constant 1 : i32
    %153 = vector.broadcast %c1_i32_57 : i32 to vector<1x256xi32>
    %154 = arith.addi %1, %153 : vector<1x256xi32>
    %c16_i32_58 = arith.constant 16 : i32
    %155 = vector.broadcast %c16_i32_58 : i32 to vector<1x256xi32>
    %156 = arith.cmpi slt, %154, %155 : vector<1x256xi32>
    %157 = arith.andi %152, %156 : vector<1x256xi1>
    %c1_i32_59 = arith.constant 1 : i32
    %158 = vector.broadcast %c1_i32_59 : i32 to vector<1x256xi32>
    %159 = arith.addi %0, %158 : vector<1x256xi32>
    %c0_i32_60 = arith.constant 0 : i32
    %160 = vector.broadcast %c0_i32_60 : i32 to vector<1x256xi32>
    %161 = arith.cmpi sge, %159, %160 : vector<1x256xi32>
    %162 = arith.andi %157, %161 : vector<1x256xi1>
    %c1_i32_61 = arith.constant 1 : i32
    %163 = vector.broadcast %c1_i32_61 : i32 to vector<1x256xi32>
    %164 = arith.addi %0, %163 : vector<1x256xi32>
    %c16_i32_62 = arith.constant 16 : i32
    %165 = vector.broadcast %c16_i32_62 : i32 to vector<1x256xi32>
    %166 = arith.cmpi slt, %164, %165 : vector<1x256xi32>
    %167 = arith.andi %162, %166 : vector<1x256xi1>
    %168 = arith.extui %167 : vector<1x256xi1> to vector<1x256xi32>
    %169 = arith.sitofp %168 : vector<1x256xi32> to vector<1x256xf32>
    %c0_63 = arith.constant 0 : index
    %c0_64 = arith.constant 0 : index
    %c0_65 = arith.constant 0 : index
    %170 = vector.load %arg3[%c0_63, %c0_64, %c0_65] : memref<1x8x256xf32, #tpu.memory_space<vmem>>, vector<1x8x256xf32>
    %171 = vector.shape_cast %170 : vector<1x8x256xf32> to vector<8x256xf32>
    %c0_66 = arith.constant 0 : index
    %c0_67 = arith.constant 0 : index
    %172 = vector.load %arg4[%c0_66, %c0_67] : memref<8x72xf32, #tpu.memory_space<vmem>>, vector<8x72xf32>
    %c0_68 = arith.constant 0 : index
    %c0_69 = arith.constant 0 : index
    %173 = vector.load %arg5[%c0_68, %c0_69] : memref<8x1xf32, #tpu.memory_space<vmem>>, vector<8x1xf32>
    %c17_i32 = arith.constant 17 : i32
    %174 = tpu.dynamic_rotate %171 by %c17_i32 dim 1 : vector<8x256xf32>, i32 -> vector<8x256xf32>
    %175 = vector.broadcast %22 : vector<1x256xf32> to vector<8x256xf32>
    %176 = arith.mulf %174, %175 : vector<8x256xf32>
    %c16_i32_70 = arith.constant 16 : i32
    %177 = tpu.dynamic_rotate %171 by %c16_i32_70 dim 1 : vector<8x256xf32>, i32 -> vector<8x256xf32>
    %178 = vector.broadcast %43 : vector<1x256xf32> to vector<8x256xf32>
    %179 = arith.mulf %177, %178 : vector<8x256xf32>
    %c15_i32 = arith.constant 15 : i32
    %180 = tpu.dynamic_rotate %171 by %c15_i32 dim 1 : vector<8x256xf32>, i32 -> vector<8x256xf32>
    %181 = vector.broadcast %64 : vector<1x256xf32> to vector<8x256xf32>
    %182 = arith.mulf %180, %181 : vector<8x256xf32>
    %c1_i32_71 = arith.constant 1 : i32
    %183 = tpu.dynamic_rotate %171 by %c1_i32_71 dim 1 : vector<8x256xf32>, i32 -> vector<8x256xf32>
    %184 = vector.broadcast %85 : vector<1x256xf32> to vector<8x256xf32>
    %185 = arith.mulf %183, %184 : vector<8x256xf32>
    %c255_i32 = arith.constant 255 : i32
    %186 = tpu.dynamic_rotate %171 by %c255_i32 dim 1 : vector<8x256xf32>, i32 -> vector<8x256xf32>
    %187 = vector.broadcast %106 : vector<1x256xf32> to vector<8x256xf32>
    %188 = arith.mulf %186, %187 : vector<8x256xf32>
    %c241_i32 = arith.constant 241 : i32
    %189 = tpu.dynamic_rotate %171 by %c241_i32 dim 1 : vector<8x256xf32>, i32 -> vector<8x256xf32>
    %190 = vector.broadcast %127 : vector<1x256xf32> to vector<8x256xf32>
    %191 = arith.mulf %189, %190 : vector<8x256xf32>
    %c240_i32 = arith.constant 240 : i32
    %192 = tpu.dynamic_rotate %171 by %c240_i32 dim 1 : vector<8x256xf32>, i32 -> vector<8x256xf32>
    %193 = vector.broadcast %148 : vector<1x256xf32> to vector<8x256xf32>
    %194 = arith.mulf %192, %193 : vector<8x256xf32>
    %c239_i32 = arith.constant 239 : i32
    %195 = tpu.dynamic_rotate %171 by %c239_i32 dim 1 : vector<8x256xf32>, i32 -> vector<8x256xf32>
    %196 = vector.broadcast %169 : vector<1x256xf32> to vector<8x256xf32>
    %197 = arith.mulf %195, %196 : vector<8x256xf32>
    %198 = tpu.concatenate %176, %179, %182, %185, %171, %188, %191, %194, %197 in 0 : vector<8x256xf32>, vector<8x256xf32>, vector<8x256xf32>, vector<8x256xf32>, vector<8x256xf32>, vector<8x256xf32>, vector<8x256xf32>, vector<8x256xf32>, vector<8x256xf32> -> vector<72x256xf32>
    %cst = arith.constant dense<0.000000e+00> : vector<8x256xf32>
    %199 = tpu.matmul %172, %198, %cst {dimension_numbers = #tpu.dot_dimension_numbers<[1], [0], [0], [1], [0, 0, 1, 1], [], []>} : vector<8x72xf32>, vector<72x256xf32>, vector<8x256xf32> -> vector<8x256xf32>
    %200 = vector.broadcast %173 : vector<8x1xf32> to vector<8x256xf32>
    %201 = arith.addf %199, %200 : vector<8x256xf32>
    %cst_72 = arith.constant 0.000000e+00 : f32
    %202 = vector.broadcast %cst_72 : f32 to vector<8x256xf32>
    %203 = arith.maximumf %201, %202 : vector<8x256xf32>
    %c0_73 = arith.constant 0 : index
    %c0_74 = arith.constant 0 : index
    %204 = vector.load %arg6[%c0_73, %c0_74] : memref<18x8xf32, #tpu.memory_space<vmem>>, vector<18x8xf32>
    %c0_75 = arith.constant 0 : index
    %c0_76 = arith.constant 0 : index
    %205 = vector.load %arg7[%c0_75, %c0_76] : memref<18x1xf32, #tpu.memory_space<vmem>>, vector<18x1xf32>
    %cst_77 = arith.constant dense<0.000000e+00> : vector<18x256xf32>
    %206 = tpu.matmul %204, %203, %cst_77 {dimension_numbers = #tpu.dot_dimension_numbers<[1], [0], [0], [1], [0, 0, 1, 1], [], []>} : vector<18x8xf32>, vector<8x256xf32>, vector<18x256xf32> -> vector<18x256xf32>
    %207 = vector.broadcast %205 : vector<18x1xf32> to vector<18x256xf32>
    %208 = arith.addf %206, %207 : vector<18x256xf32>
    %c0_78 = arith.constant 0 : index
    %c0_79 = arith.constant 0 : index
    %c0_80 = arith.constant 0 : index
    %209 = vector.load %arg8[%c0_78, %c0_79, %c0_80] : memref<1x18x256xf32, #tpu.memory_space<vmem>>, vector<1x18x256xf32>
    %210 = vector.shape_cast %209 : vector<1x18x256xf32> to vector<18x256xf32>
    %211 = vector.shape_cast %208 : vector<18x256xf32> to vector<1x18x256xf32>
    tpu.vector_store %arg8[%c0_78, %c0_79, %c0_80], %211 {strides = array<i32>} : memref<1x18x256xf32, #tpu.memory_space<vmem>>, vector<1x18x256xf32>,
    return
  }
  func.func @transform_0(%arg0: i32) -> (i32, i32) {
    %c0_i32 = arith.constant 0 : i32
    %c0_i32_0 = arith.constant 0 : i32
    %c0_i32_1 = arith.constant 0 : i32
    return %c0_i32, %c0_i32_0 : i32, i32
  }
  func.func @transform_1(%arg0: i32) -> (i32, i32) {
    %c0_i32 = arith.constant 0 : i32
    %c0_i32_0 = arith.constant 0 : i32
    %c0_i32_1 = arith.constant 0 : i32
    return %c0_i32, %c0_i32_0 : i32, i32
  }
  func.func @transform_2(%arg0: i32) -> (i32, i32, i32) {
    %c0_i32 = arith.constant 0 : i32
    %c0_i32_0 = arith.constant 0 : i32
    %c0_i32_1 = arith.constant 0 : i32
    return %arg0, %c0_i32, %c0_i32_0 : i32, i32, i32
  }
  func.func @transform_3(%arg0: i32) -> (i32, i32) {
    %c0_i32 = arith.constant 0 : i32
    %c0_i32_0 = arith.constant 0 : i32
    %c0_i32_1 = arith.constant 0 : i32
    return %c0_i32, %c0_i32_0 : i32, i32
  }
  func.func @transform_4(%arg0: i32) -> (i32, i32) {
    %c0_i32 = arith.constant 0 : i32
    %c0_i32_0 = arith.constant 0 : i32
    %c0_i32_1 = arith.constant 0 : i32
    return %c0_i32, %c0_i32_0 : i32, i32
  }
  func.func @transform_5(%arg0: i32) -> (i32, i32) {
    %c0_i32 = arith.constant 0 : i32
    %c0_i32_0 = arith.constant 0 : i32
    %c0_i32_1 = arith.constant 0 : i32
    return %c0_i32, %c0_i32_0 : i32, i32
  }
  func.func @transform_6(%arg0: i32) -> (i32, i32) {
    %c0_i32 = arith.constant 0 : i32
    %c0_i32_0 = arith.constant 0 : i32
    %c0_i32_1 = arith.constant 0 : i32
    return %c0_i32, %c0_i32_0 : i32, i32
  }
  func.func @transform_7(%arg0: i32) -> (i32, i32, i32) {
    %c0_i32 = arith.constant 0 : i32
    %c0_i32_0 = arith.constant 0 : i32
    %c0_i32_1 = arith.constant 0 : i32
    return %arg0, %c0_i32, %c0_i32_0 : i32, i32, i32
  }
}

</mosaic_0001>

<bundles_post_ra>
// kernel: displacement_layer_2d.1
= control target key start
LH: loop header
LB: loop body
LE: loop exit
PB: predicated region body
PF: predicated region fallthrough
CT: control target
= control target key end

     0   :  { %s857_s24 = smov 0   ;;  %s1056_s0 = inlined_call_operand.vmem [shape: s32[1,256], index: 0, kind: input, shape index: {}]   ;;  %s1057_s1 = inlined_call_operand.vmem [shape: s32[1,256], index: 1, kind: input, shape index: {}]   ;;  %s1058_s2 = inlined_call_operand.vmem [shape: f32[2,8,256], index: 2, kind: input, shape index: {}]   ;;  %s1059_s3 = inlined_call_operand.vmem [shape: f32[8,72], index: 3, kind: input, shape index: {}]   ;;  %s1060_s4 = inlined_call_operand.vmem [shape: f32[8,1], index: 4, kind: input, shape index: {}]   ;;  %s1061_s5 = inlined_call_operand.vmem [shape: f32[18,8], index: 5, kind: input, shape index: {}]   ;;  %s1062_s6 = inlined_call_operand.vmem [shape: f32[18,1], index: 6, kind: input, shape index: {}]   ;;  %s1063_s7 = inlined_call_operand.vmem [shape: f32[2,18,256], index: 7, kind: output, shape index: {}]  }
   0x1 LB: > { %s755_s25 = sadd.s32 4294967295, %s805_s24   ;;  %p759_p0 = scmp.ge.s32.totalorder %s805_s24, 1  ;;  %s805_s24 = sphi %s857_s24, %s17_s24  }
   0x2   : > { %p237_p1 = scmp.lt.s32.totalorder %s805_s24, 3 }
   0x4   : > { %p238_p2 = pnand %p759_p0, %p237_p1 }
   0x5   : > { %p269_p3 = scmp.lt.s32.totalorder (!%p238_p2), %s755_s25, 1  ;;  %s808_s30 = smov (!%p238_p2), 112  }
   0x6   : > { %241 = sbr.rel (%p238_p2) target bundleno = 570 (0x23a), region = 48  ;;  %s809_s8 = smov (!%p238_p2), 111  }
   0x7   : > { %s810_s9 = smov (!%p238_p2), 113   ;;  %s811_s10 = smov (!%p238_p2), 127  }
   0x8   : > { %s812_s11 = smov (!%p238_p2), 1   ;;  %s813_s12 = smov (!%p238_p2), 15  }
   0x9   : > { %s815_s13 = smov (!%p238_p2), 16   ;;  %s816_s14 = smov (!%p238_p2), 17  }
   0xb   : > { %s1071_s25 = smov (!%p269_p3, %s755_s25), 1  ;;  %v807_v0 = vmov 0.0   ;;  %v814_v3 = vmov 0   ;;  %v335_v4 = vld [vmem:[%s1060_s4] sm:$0xff]  ;;  %v585_v5 = vld [vmem:[%s1062_s6 + $0x10] sm:$0x3]  ;;  %v340_v12 = vlaneseq }
   0xc   : > { %571 = vmatprep.mubr.f32.mxu0 %v807_v0  ;;  %675 = vmatprep.mubr.f32.mxu1 %v807_v0  ;;  %s777_s26 = sshll.u32 %s1071_s25, 4  ;;  %v280_v6 = vld [vmem:[%s1057_s1] sm:$0x3] }
   0xd   : > { %s273_s29 = scalar_lea.vmem %s1058_s2, %s777_s26  ;;  %797 = vset.pattern.permute.xlu0 %v814_v3  ;;  %798 = vset.pattern.permute.xlu1 %v814_v3  ;;  %v905_v7 = vld [vmem:[%s1056_s0] sm:$0x3]  ;;  %v316_v8 = vadd.s32 1, %v280_v6  ;;  %v347_v13 = vshrl.u32 %v340_v12, 7  ;;  %vm305_vm11 = vcmp.ge.s32.totalorder %v280_v6, 0  ;;  %vm306_vm12 = vcmp.lt.s32.totalorder %v280_v6, 16 }
   0xe   : > { %v873_v1 = vld [vmem:[%s273_s29] sm:$0xff]  ;;  %v877_v2 = vld [vmem:[%s273_s29 + $0x8] sm:$0xff]  ;;  %v908_v9 = vadd.s32 1, %v905_v7  ;;  %v916_v11 = vadd.s32 4294967295, %v905_v7  ;;  %vm292_vm4 = vcmp.ge.s32.totalorder %v905_v7, 0  ;;  %vm294_vm8 = vcmp.lt.s32.totalorder %v905_v7, 16 }
   0xf   : > { %458 = vrot.lane.b32.xlu1 %v873_v1, %s808_s30  ;;  %478 = vrot.lane.b32.xlu0 %v873_v1, %s809_s8  ;;  %vm317_vm0 = vcmp.ge.s32.totalorder %v316_v8, 0  ;;  %vm318_vm1 = vcmp.lt.s32.totalorder %v316_v8, 16  ;;  %v939_v14 = vand.u32 127, %v340_v12  ;;  %v941_v15 = vsub.s32 0, %v347_v13 }
  0x10   : > { %vm910_vm2 = vmand %vm317_vm0, %vm318_vm1  ;;  %vm299_vm3 = vcmp.ge.s32.totalorder %v908_v9, 0  ;;  %vm301_vm5 = vcmp.lt.s32.totalorder %v908_v9, 16  ;;  %vm286_vm7 = vcmp.ge.s32.totalorder %v916_v11, 0  ;;  %vm288_vm13 = vcmp.lt.s32.totalorder %v916_v11, 16 }
  0x11   : > { %vm328_vm6 = vmand %vm910_vm2, %vm299_vm3  ;;  %v943_v16 = vsub.s32 1, %v347_v13  ;;  %v281_v19 = vadd.s32 4294967295, %v280_v6 }
  0x12   : > { %vm324_vm9 = vmand %vm910_vm2, %vm292_vm4 }
  0x13   : > { %460 = vrot.lane.b32.xlu1 %v877_v2, %s808_s30  ;;  %480 = vrot.lane.b32.xlu0 %v877_v2, %s809_s8  ;;  %vm329_vm10 = vmand %vm328_vm6, %vm301_vm5 }
  0x14   : > { %vm320_vm14 = vmand %vm910_vm2, %vm286_vm7  ;;  %v770_v18 = vsel %vm329_vm10, 1.0, %v807_v0  ;;  %vm462_vm2 = vcmp.lt.s32.totalorder %v939_v14, 112  ;;  %vm282_vm10 = vcmp.ge.s32.totalorder %v281_v19, 0 }
  0x15   : > { %vm325_vm15 = vmand %vm324_vm9, %vm294_vm8  ;;  %vm482_vm9 = vcmp.lt.s32.totalorder %v939_v14, 111  ;;  %v493_v23 = vrot.slane %v770_v18, %v943_v16  ;;  %v489_v25 = vrot.slane %v770_v18, %v941_v15 }
  0x16   : > { %vm945_vm0 = vmand %vm305_vm11, %vm306_vm12  ;;  %v769_v22 = vsel %vm325_vm15, 1.0, %v807_v0  ;;  %vm283_vm11 = vcmp.lt.s32.totalorder %v281_v19, 16  ;;  %vm442_vm12 = vcmp.lt.s32.totalorder %v939_v14, 113 }
  0x17   : > { %440 = vrot.lane.b32.xlu1 %v877_v2, %s810_s9  ;;  %438 = vrot.lane.b32.xlu0 %v873_v1, %s810_s9  ;;  %vm321_vm1 = vmand %vm320_vm14, %vm288_vm13  ;;  %v469_v26 = vrot.slane %v769_v22, %v941_v15  ;;  %v473_v27 = vrot.slane %v769_v22, %v943_v16 }
  0x18   : > { %vm312_vm6 = vmand %vm945_vm0, %vm299_vm3  ;;  %v768_v24 = vsel %vm321_vm1, 1.0, %v807_v0 }
  0x19   : > { %vm313_vm14 = vmand %vm312_vm6, %vm301_vm5  ;;  %v449_v33 = vrot.slane %v768_v24, %v941_v15  ;;  %v453_v36 = vrot.slane %v768_v24, %v943_v16 }
  0x1a   : > { %vm308_vm15 = vmand %vm945_vm0, %vm286_vm7  ;;  %v767_v39 = vsel %vm313_vm14, 1.0, %v807_v0  ;;  %vm601_vm14 = vcmask 64512  }
  0x1b   : > { %420 = vrot.lane.b32.xlu1 %v877_v2, %s811_s10  ;;  %418 = vrot.lane.b32.xlu0 %v873_v1, %s811_s10  ;;  %vm979_vm1 = vmand %vm282_vm10, %vm283_vm11  ;;  %v429_v48 = vrot.slane %v767_v39, %v941_v15  ;;  %v433_v49 = vrot.slane %v767_v39, %v943_v16  ;;  %vm382_vm11 = vcmp.lt.s32.totalorder %v939_v14, 15  ;;  %v580_v39 = vld [vmem:[%s1061_s5] sm:$0xff] }
  0x1c   : > { %vm309_vm0 = vmand %vm308_vm15, %vm288_vm13 }
  0x1d   : > { %vm300_vm6 = vmand %vm979_vm1, %vm299_vm3  ;;  %v766_v50 = vsel %vm309_vm0, 1.0, %v807_v0  ;;  %vm402_vm3 = vcmp.lt.s32.totalorder %v939_v14, 1 }
  0x1e   : > { %vm293_vm10 = vmand %vm979_vm1, %vm292_vm4  ;;  %v409_v57 = vrot.slane %v766_v50, %v941_v15  ;;  %v413_v58 = vrot.slane %v766_v50, %v943_v16 }
  0x1f   : > { %400 = vrot.lane.b32.xlu1 %v877_v2, %s812_s11  ;;  %398 = vrot.lane.b32.xlu0 %v873_v1, %s812_s11  ;;  %vm287_vm4 = vmand %vm979_vm1, %vm286_vm7  ;;  %vm362_vm7 = vcmp.lt.s32.totalorder %v939_v14, 16 }
  0x23   : > { %380 = vrot.lane.b32.xlu1 %v877_v2, %s813_s12  ;;  %378 = vrot.lane.b32.xlu0 %v873_v1, %s813_s12 }
  0x27   : > { %360 = vrot.lane.b32.xlu1 %v877_v2, %s815_s13  ;;  %358 = vrot.lane.b32.xlu0 %v873_v1, %s815_s13 }
  0x2b   : > { %338 = vrot.lane.b32.xlu1 %v877_v2, %s816_s14  ;;  %336 = vrot.lane.b32.xlu0 %v873_v1, %s816_s14  ;;  %s778_s14 = smul.u32 48, %s1071_s25 }
  0x2d   : > { %s278_s17 = scalar_lea.vmem %s1063_s7, %s778_s14 }
  0x2f   : > { %500 = vperm.xlu0 %797, %v335_v4  }
  0x33   : > { %598 = vperm.xlu0 %797, %v585_v5  }
  0x81   : > { %v459_v20 = vpop.permute.xlu1 %458  ;;  %v479_v21 = vpop.permute.xlu0 %478 }
  0x85   : > { %v461_v28 = vpop.permute.xlu1 %460  ;;  %v481_v29 = vpop.permute.xlu0 %480 }
  0x86   : > { %v464_v30 = vsel %vm462_vm2, %v461_v28, %v459_v20  ;;  %v483_v31 = vsel %vm482_vm9, %v479_v21, %v481_v29  ;;  %v484_v32 = vsel %vm482_vm9, %v481_v29, %v479_v21  ;;  %v463_v34 = vsel %vm462_vm2, %v459_v20, %v461_v28  ;;  %vm302_vm9 = vmand %vm300_vm6, %vm301_vm5 }
  0x87   : > { %v497_v35 = vmul.f32 %v493_v23, %v484_v32  ;;  %v496_v37 = vmul.f32 %v489_v25, %v483_v31  ;;  %v477_v40 = vmul.f32 %v473_v27, %v464_v30  ;;  %v476_v43 = vmul.f32 %v469_v26, %v463_v34  ;;  %vm295_vm5 = vmand %vm293_vm10, %vm294_vm8  ;;  %v334_v32 = vld [vmem:[%s1059_s3] sm:$0xff] }
  0x88   : > { %vm422_vm2 = vcmp.lt.s32.totalorder %v939_v14, 127  ;;  %v765_v59 = vsel %vm302_vm9, 1.0, %v807_v0  ;;  %v764_v7 = vsel %vm295_vm5, 1.0, %v807_v0  ;;  %vm289_vm8 = vmand %vm287_vm4, %vm288_vm13  ;;  %vm342_vm13 = vcmp.lt.s32.totalorder %v939_v14, 17  ;;  %v583_v14 = vld [vmem:[%s1062_s6] sm:$0xff] }
  0x89   : > { %v441_v41 = vpop.permute.xlu1 %440  ;;  %521 = vmatprep.subr.mxu0 %v497_v35  ;;  %v439_v42 = vpop.permute.xlu0 %438  ;;  %v389_v5 = vrot.slane %v765_v59, %v941_v15  ;;  %v393_v6 = vrot.slane %v765_v59, %v943_v16  ;;  %v369_v17 = vrot.slane %v764_v7, %v941_v15  ;;  %v373_v18 = vrot.slane %v764_v7, %v943_v16 }
  0x8a   : > { %v443_v44 = vsel %vm442_vm12, %v439_v42, %v441_v41  ;;  %v444_v45 = vsel %vm442_vm12, %v441_v41, %v439_v42  ;;  %522 = vmatpush1.msra.mxu0 %v496_v37  ;;  %vm503_vm12 = vcmask 588800   ;;  %588 = vperm.xlu1 %798, %v583_v14   ;;  %v582_v41 = vld [vmem:[%s1061_s5 + $0x10] sm:$0x3] }
  0x8b   : > { %v456_v46 = vmul.f32 %v449_v33, %v443_v44  ;;  %v457_v47 = vmul.f32 %v453_v36, %v444_v45  ;;  %523 = vmatprep.subr.mxu0 %v477_v40  ;;  %v581_v40 = vld [vmem:[%s1061_s5 + $0x8] sm:$0xff] }
  0x8c   : > { %524 = vmatpush1.msra.mxu0 %v476_v43 }
  0x8d   : > { %v421_v51 = vpop.permute.xlu1 %420  ;;  %525 = vmatprep.subr.mxu0 %v457_v47  ;;  %v419_v52 = vpop.permute.xlu0 %418 }
  0x8e   : > { %v423_v53 = vsel %vm422_vm2, %v419_v52, %v421_v51  ;;  %v424_v54 = vsel %vm422_vm2, %v421_v51, %v419_v52  ;;  %526 = vmatpush1.msra.mxu0 %v456_v46 }
  0x8f   : > { %v436_v55 = vmul.f32 %v429_v48, %v423_v53  ;;  %v437_v56 = vmul.f32 %v433_v49, %v424_v54 }
  0x91   : > { %v401_v60 = vpop.permute.xlu1 %400  ;;  %527 = vmatprep.subr.mxu0 %v437_v56  ;;  %v399_v61 = vpop.permute.xlu0 %398 }
  0x92   : > { %v403_v62 = vsel %vm402_vm3, %v399_v61, %v401_v60  ;;  %v404_v63 = vsel %vm402_vm3, %v401_v60, %v399_v61  ;;  %528 = vmatpush1.msra.mxu0 %v436_v55 }
  0x93   : > { %v416_v3 = vmul.f32 %v409_v57, %v404_v63  ;;  %v417_v4 = vmul.f32 %v413_v58, %v403_v62  ;;  %529 = vmatprep.subr.mxu0 %v877_v2 }
  0x94   : > { %530 = vmatpush1.msra.mxu0 %v873_v1  ;;  %v763_v1 = vsel %vm289_vm8, 1.0, %v807_v0 }
  0x95   : > { %v381_v8 = vpop.permute.xlu1 %380  ;;  %531 = vmatprep.subr.mxu0 %v417_v4  ;;  %v379_v9 = vpop.permute.xlu0 %378  ;;  %v349_v24 = vrot.slane %v763_v1, %v941_v15  ;;  %v353_v25 = vrot.slane %v763_v1, %v943_v16  ;;  %v584_v15 = vld [vmem:[%s1062_s6 + $0x8] sm:$0xff] }
  0x96   : > { %v383_v10 = vsel %vm382_vm11, %v379_v9, %v381_v8  ;;  %v384_v12 = vsel %vm382_vm11, %v381_v8, %v379_v9  ;;  %532 = vmatpush1.msra.mxu0 %v416_v3  ;;  %593 = vperm.xlu1 %798, %v584_v15  }
  0x97   : > { %v396_v2 = vmul.f32 %v389_v5, %v384_v12  ;;  %v397_v13 = vmul.f32 %v393_v6, %v383_v10 }
  0x99   : > { %v361_v19 = vpop.permute.xlu1 %360  ;;  %533 = vmatprep.subr.mxu0 %v397_v13  ;;  %v359_v20 = vpop.permute.xlu0 %358 }
  0x9a   : > { %v363_v21 = vsel %vm362_vm7, %v359_v20, %v361_v19  ;;  %v364_v22 = vsel %vm362_vm7, %v361_v19, %v359_v20  ;;  %534 = vmatpush1.msra.mxu0 %v396_v2 }
  0x9b   : > { %v376_v11 = vmul.f32 %v369_v17, %v364_v22  ;;  %v377_v23 = vmul.f32 %v373_v18, %v363_v21 }
  0x9d   : > { %v339_v26 = vpop.permute.xlu1 %338  ;;  %535 = vmatprep.subr.mxu0 %v377_v23  ;;  %v337_v27 = vpop.permute.xlu0 %336 }
  0x9e   : > { %v343_v28 = vsel %vm342_vm13, %v337_v27, %v339_v26  ;;  %v344_v29 = vsel %vm342_vm13, %v339_v26, %v337_v27  ;;  %536 = vmatpush1.msra.mxu0 %v376_v11 }
  0x9f   : > { %v356_v30 = vmul.f32 %v349_v24, %v344_v29  ;;  %v357_v31 = vmul.f32 %v353_v25, %v343_v28 }
  0xa1   : > { %537 = vmatprep.subr.mxu0 %v357_v31 }
  0xa2   : > { %538 = vmatpush1.msra.mxu0 %v356_v30 }
  0xa3   : > { %771 = vmatmul.mubr.msk.f32.vlgmr.msra.gmra.mxu0 %vm503_vm12, %v334_v32 }
  0xaa   : > { %v501_v33 = vpop.permute.xlu0 %500 }
  0xae   : > { %v599_v51 = vpop.permute.xlu0 %598 }
 0x105   : > { %v589_v42 = vpop.permute.xlu1 %588 }
 0x111   : > { %v594_v46 = vpop.permute.xlu1 %593 }
 0x163   : > { %v573_v16 = vpop.f32.mrf.mxu0 }
 0x164   : > { %v574_v34 = vadd.f32 %v573_v16, %v501_v33 }
 0x165   : > { %v575_v35 = vpop.f32.mrf.mxu0 }
 0x166   : > { %v576_v36 = vadd.f32 %v575_v35, %v501_v33  ;;  %v578_v38 = vmax.f32 %v574_v34, 0.0 }
 0x168   : > { %v579_v37 = vmax.f32 %v576_v36, 0.0 }
 0x16a   : > { %641 = vmatprep.subr.mxu1 %v579_v37 }
 0x16b   : > { %642 = vmatpush1.msra.mxu1 %v578_v38 }
 0x16c   : > { %772 = vmatmul.mubr.msk.f32.vlgmr.msra.gmra.mxu1 %vm601_vm14, %v580_v39 }
 0x16d   : > { %681 = vmatprep.mubr.f32.mxu1 %v807_v0 }
 0x170   : > { %773 = vmatmul.mubr.msk.f32.gmra.mxu1 %vm601_vm14, %v581_v40 }
 0x171   : > { %687 = vmatprep.mubr.f32.mxu1 %v807_v0 }
 0x174   : > { %774 = vmatmul.mubr.msk.f32.gmra.mxu1 %vm601_vm14, %v582_v41 }
 0x22c   : > { %v677_v43 = vpop.f32.mrf.mxu1 }
 0x22d   : > { %v678_v44 = vadd.f32 %v677_v43, %v589_v42 }
 0x22e   : > { %v679_v45 = vpop.f32.mrf.mxu1 }
 0x22f   : > { %694 = vst [vmem:[%s278_s17] sm:$0xff] %v678_v44  ;;  %v680_v47 = vadd.f32 %v679_v45, %v589_v42 }
 0x230   : > { %v683_v48 = vpop.f32.mrf.mxu1 }
 0x231   : > { %695 = vst [vmem:[%s278_s17 + $0x8] sm:$0xff] %v680_v47  ;;  %v684_v0 = vadd.f32 %v683_v48, %v594_v46 }
 0x232   : > { %v685_v49 = vpop.f32.mrf.mxu1 }
 0x233   : > { %696 = vst [vmem:[%s278_s17 + $0x10] sm:$0xff] %v684_v0  ;;  %v686_v50 = vadd.f32 %v685_v49, %v594_v46 }
 0x234   : > { %v689_v52 = vpop.f32.mrf.mxu1 }
 0x235   : > { %697 = vst [vmem:[%s278_s17 + $0x18] sm:$0xff] %v686_v50  ;;  %v690_v53 = vadd.f32 %v689_v52, %v599_v51 }
 0x236   : > { %v691_v54 = vpop.f32.mrf.mxu1 }
 0x237   : > { %698 = vst [vmem:[%s278_s17 + $0x20] sm:$0x3] %v690_v53  ;;  %v692_v55 = vadd.f32 %v691_v54, %v599_v51 }
 0x239   : > { %699 = vst [vmem:[%s278_s17 + $0x28] sm:$0x3] %v692_v55 }
 0x23a PF: > { %s17_s24 = sadd.s32 1, %s805_s24  }
 0x23b   : > { %p14_p4 = scmp.ge.s32.totalorder %s17_s24, 4  }
 0x23d   :  { %16 = sbr.rel (!%p14_p4) target bundleno = 1 (0x1), region = 78 }

</bundles_post_ra>
